<compile_context>
chip_gen: v5e
topology: v5e:2x2
jax: 0.10.0
libtpu: 0.0.40
codegen_flags: <defaults>
</compile_context>

<pallas_src>
import functools

import jax
import jax.numpy as jnp
from jax import lax
from jax.experimental import pallas as pl
from jax.experimental.pallas import tpu as pltpu

_INT32_MAX = jnp.iinfo(jnp.int32).max
_POINTS_PER_ROW = 128
_LANES = 3 * _POINTS_PER_ROW          # 384; coordinate id == lane % 3
_TEMP_FACTOR = 6                      # 2x in (dbuf) + 2x out (dbuf) + ~2x temporaries
_DEFAULT_TILE_BUDGET = 4 * 1024 * 1024
_PIPELINE_THRESHOLD = 4 * 1024 * 1024  # B<=2 blocks larger than this go tiled


def _vmem_capacity_bytes() -> int:
    try:
        return int(pltpu.get_tpu_info().vmem_capacity_bytes)
    except Exception:
        return 64 * 1024 * 1024       # conservative: v7x per-TC physical VMEM


def _vmem_limit(block_bytes: int, capacity: int) -> int:
    cap = capacity * 3 // 4           # headroom vs. physical VMEM
    need = _TEMP_FACTOR * block_bytes
    return int(min(cap, max(32 * 1024 * 1024, need)))


def _voxelize_reference(xyz: jax.Array, voxel_size: float) -> jax.Array:
    """Pure-jnp reference (identical semantics to the PyTorch module)."""
    v = jnp.floor(xyz / voxel_size).astype(jnp.int32)
    return v - jnp.min(v, axis=1, keepdims=True)


def _min_sel_from_colmin(col_min: jax.Array, cid: jax.Array) -> jax.Array:
    """(1,1,384) per-column mins -> (1,1,384) broadcastable per-coordinate min."""
    big = jnp.array(_INT32_MAX, jnp.int32)
    m0 = jnp.where(cid == 0, col_min, big).min(axis=2, keepdims=True)
    m1 = jnp.where(cid == 1, col_min, big).min(axis=2, keepdims=True)
    m2 = jnp.where(cid == 2, col_min, big).min(axis=2, keepdims=True)
    return jnp.where(cid == 0, m0, jnp.where(cid == 1, m1, m2))


# ---------------------------------------------------------------------------
# Fused single-pass kernel: one full batch element per grid step.
# ---------------------------------------------------------------------------
def _fused_kernel(xyz_ref, out_ref, *, voxel_size: float):
    x = xyz_ref[...]                                       # (1, S, 384)
    v = jnp.floor(x / voxel_size).astype(jnp.int32)
    cid = lax.broadcasted_iota(jnp.int32, (1, 1, x.shape[2]), 2) % 3
    col_min = v.min(axis=1, keepdims=True)                 # (1, 1, 384)
    out_ref[...] = v - _min_sel_from_colmin(col_min, cid)


def _run_fused(flat: jax.Array, voxel_size: float, capacity: int) -> jax.Array:
    b, s, l = flat.shape
    block_bytes = s * l * 4
    kernel = functools.partial(_fused_kernel, voxel_size=voxel_size)
    return pl.pallas_call(
        kernel,
        out_shape=jax.ShapeDtypeStruct((b, s, l), jnp.int32),
        grid_spec=pltpu.PrefetchScalarGridSpec(
            num_scalar_prefetch=0,
            grid=(b,),
            in_specs=[pl.BlockSpec((1, s, l), lambda i: (i, 0, 0))],
            out_specs=pl.BlockSpec((1, s, l), lambda i: (i, 0, 0)),
        ),
        compiler_params=pltpu.CompilerParams(
            dimension_semantics=("parallel",),
            vmem_limit_bytes=_vmem_limit(block_bytes, capacity),
        ),
    )(flat)


# ---------------------------------------------------------------------------
# Two-pass tiled path (bounded VMEM, pipelined): pass 1 accumulates per-column
# mins over N tiles; pass 2 subtracts, with the mins delivered via SMEM scalar
# prefetch.
# ---------------------------------------------------------------------------
def _min_kernel(xyz_ref, acc_ref, *, voxel_size: float, last_tile_rows):
    t = pl.program_id(1)
    nt = pl.num_programs(1)

    @pl.when(t == 0)
    def _():
        acc_ref[...] = jnp.full(acc_ref.shape, _INT32_MAX, jnp.int32)

    x = xyz_ref[...]                                       # (1, TR, 384)
    v = jnp.floor(x / voxel_size).astype(jnp.int32)

    if last_tile_rows is None:
        # Every tile is full: unmasked fast path.
        acc_ref[...] = jnp.minimum(acc_ref[...], v.min(axis=1, keepdims=True))
    else:
        @pl.when(t != nt - 1)
        def _():
            acc_ref[...] = jnp.minimum(acc_ref[...], v.min(axis=1, keepdims=True))

        @pl.when(t == nt - 1)
        def _():
            rows = lax.broadcasted_iota(jnp.int32, (1, v.shape[1], 1), 1)
            big = jnp.array(_INT32_MAX, jnp.int32)
            vm = jnp.where(rows < last_tile_rows, v, big)  # mask ragged rows
            acc_ref[...] = jnp.minimum(acc_ref[...], vm.min(axis=1, keepdims=True))


def _sub_kernel(mins_ref, xyz_ref, out_ref, *, voxel_size: float):
    # mins_ref: (B, 3) int32 in SMEM (scalar prefetch); xyz/out: (1, TR, 384).
    b = pl.program_id(0)
    x = xyz_ref[...]
    v = jnp.floor(x / voxel_size).astype(jnp.int32)
    cid = lax.broadcasted_iota(jnp.int32, (1, 1, x.shape[2]), 2) % 3
    m0 = mins_ref[b, 0]
    m1 = mins_ref[b, 1]
    m2 = mins_ref[b, 2]
    min_sel = jnp.where(cid == 0, m0, jnp.where(cid == 1, m1, m2))  # (1,1,384)
    out_ref[...] = v - min_sel


def _run_tiled(flat: jax.Array, voxel_size: float, capacity: int,
               tile_budget_bytes: int) -> jax.Array:
    b, s, l = flat.shape
    tile_bytes = max(8 * l * 4,
                     min(tile_budget_bytes, capacity // (4 * _TEMP_FACTOR)))
    tr = max(8, (tile_bytes // (l * 4)) // 8 * 8)
    tr = min(tr, ((s + 7) // 8) * 8)
    nt = -(-s // tr)
    last = s - (nt - 1) * tr
    last_tile_rows = None if last == tr else last
    tile_block_bytes = tr * l * 4

    # Pass 1: per-batch, per-column min accumulated over N tiles.
    min_kernel = functools.partial(_min_kernel, voxel_size=voxel_size,
                                   last_tile_rows=last_tile_rows)
    col_mins = pl.pallas_call(
        min_kernel,
        out_shape=jax.ShapeDtypeStruct((b, 1, l), jnp.int32),
        grid_spec=pltpu.PrefetchScalarGridSpec(
            num_scalar_prefetch=0,
            grid=(b, nt),
            in_specs=[pl.BlockSpec((1, tr, l), lambda i, t: (i, t, 0))],
            out_specs=pl.BlockSpec((1, 1, l), lambda i, t: (i, 0, 0)),
        ),
        compiler_params=pltpu.CompilerParams(
            dimension_semantics=("parallel", "arbitrary"),
            vmem_limit_bytes=_vmem_limit(tile_block_bytes, capacity),
        ),
    )(flat)

    # Tiny cross-lane finish of the reduction: (B, 1, 384) -> (B, 3).
    mins = col_mins.reshape(b, _POINTS_PER_ROW, 3).min(axis=1).astype(jnp.int32)

    # Pass 2: subtract the per-batch mins (scalar-prefetched), lane-dense writes.
    sub_kernel = functools.partial(_sub_kernel, voxel_size=voxel_size)
    coords = pl.pallas_call(
        sub_kernel,
        out_shape=jax.ShapeDtypeStruct((b, s, l), jnp.int32),
        grid_spec=pltpu.PrefetchScalarGridSpec(
            num_scalar_prefetch=1,
            grid=(b, nt),
            in_specs=[pl.BlockSpec((1, tr, l), lambda i, t, mins_ref: (i, t, 0))],
            out_specs=pl.BlockSpec((1, tr, l), lambda i, t, mins_ref: (i, t, 0)),
        ),
        compiler_params=pltpu.CompilerParams(
            dimension_semantics=("parallel", "parallel"),
            vmem_limit_bytes=_vmem_limit(tile_block_bytes, capacity),
        ),
    )(mins, flat)
    return coords


# ---------------------------------------------------------------------------
# Public wrapper (PointToVoxel.forward equivalent).
# ---------------------------------------------------------------------------
def point_to_voxel(xyz: jax.Array,
                   features: jax.Array | None = None,
                   voxel_size: float = 0.05,
                   *,
                   use_pallas: bool | None = None,
                   force_path: str | None = None,
                   tile_budget_bytes: int = _DEFAULT_TILE_BUDGET):
    """JAX/Pallas equivalent of PointToVoxel.forward.

    Args:
      xyz:      (B, N, 3) float point coordinates.
      features: optional (B, N, C) point features (passed through).
      voxel_size: scalar voxel edge length (static).
      use_pallas: None = auto (jnp for tiny inputs), True/False = force.
      force_path: None | "fused" | "tiled" (testing hook).
    """
    B, N, three = xyz.shape
    assert three == 3

    if use_pallas is None:
        use_pallas = B * N >= 65536

    if not use_pallas:
        voxel_coords = _voxelize_reference(xyz, voxel_size)
    else:
        # Pad N to a multiple of 128 by replicating the last point ("edge"):
        # duplicated points cannot change any per-batch per-coordinate min, so
        # padded rows need no masking anywhere.
        n_pad = ((N + _POINTS_PER_ROW - 1) // _POINTS_PER_ROW) * _POINTS_PER_ROW
        xyz_f = xyz.astype(jnp.float32)
        if n_pad != N:
            xyz_f = jnp.pad(xyz_f, ((0, 0), (0, n_pad - N), (0, 0)), mode="edge")
        s = n_pad // _POINTS_PER_ROW
        flat = xyz_f.reshape(B, s, _LANES)          # free contiguous reshape

        capacity = _vmem_capacity_bytes()
        block_bytes = s * _LANES * 4
        fused_fits = _TEMP_FACTOR * block_bytes <= capacity * 3 // 4
        # grid=(B,) gives no DMA/compute overlap within a batch element, so
        # small-B / large-N inputs go to the pipelined tiled path.
        prefer_tiled = (B <= 2) and (block_bytes > _PIPELINE_THRESHOLD)

        path = force_path
        if path is None:
            path = "fused" if (fused_fits and not prefer_tiled) else "tiled"

        if path == "fused":
            coords_flat = _run_fused(flat, voxel_size, capacity)
        else:
            coords_flat = _run_tiled(flat, voxel_size, capacity, tile_budget_bytes)

        voxel_coords = coords_flat.reshape(B, n_pad, 3)[:, :N, :]

    # TODO(synk): `create_sparse_tensor` / SparseTensor is not defined in the
    # reference source; represent the sparse tensor as a (features, coords) pair.
    sparse_tensor = (features, voxel_coords)
    return sparse_tensor, voxel_coords


if __name__ == "__main__":
    key = jax.random.PRNGKey(0)
    k1, k2, k3, k4 = jax.random.split(key, 4)
    voxel_size = 0.05

    # Case 1: fused single-pass path, dense (B, N/128, 384) layout.
    B, N, C = 2, 256, 4
    xyz = jax.random.uniform(k1, (B, N, 3), jnp.float32, minval=-1.0, maxval=1.0)
    features = jax.random.normal(k2, (B, N, C), jnp.float32)
    (sp_feats, sp_coords), vc = point_to_voxel(xyz, features, voxel_size,
                                               use_pallas=True)
    vc = jax.block_until_ready(vc)
    ref = _voxelize_reference(xyz, voxel_size)
    assert vc.shape == (B, N, 3) and vc.dtype == jnp.int32
    assert bool(jnp.all(vc == ref))
    assert sp_coords is vc and sp_feats is features

    # Case 2: N not a multiple of 128 -> edge-padded dense layout.
    N2 = 100
    xyz2 = jax.random.uniform(k3, (B, N2, 3), jnp.float32, minval=-5.0, maxval=5.0)
    _, vc2 = point_to_voxel(xyz2, None, voxel_size, use_pallas=True)
    vc2 = jax.block_until_ready(vc2)
    assert vc2.shape == (B, N2, 3)
    assert bool(jnp.all(vc2 == _voxelize_reference(xyz2, voxel_size)))

    # Case 3: forced two-pass tiled path with a tiny tile budget so this small
    # input exercises multiple N tiles including a ragged (masked) last tile.
    N3 = 1280                      # S = 10 rows -> TR = 8 -> 2 tiles, last ragged
    xyz3 = jax.random.uniform(k4, (B, N3, 3), jnp.float32, minval=-2.0, maxval=2.0)
    _, vc3 = point_to_voxel(xyz3, None, voxel_size, use_pallas=True,
                            force_path="tiled", tile_budget_bytes=16 * 1024)
    vc3 = jax.block_until_ready(vc3)
    assert bool(jnp.all(vc3 == _voxelize_reference(xyz3, voxel_size)))

    print("KERNEL_OK")
</pallas_src>

<mosaic_0001>
module attributes {stable_mosaic.version = 11 : i64} {
  func.func @_fused_kernel(%arg0: i32, %arg1: memref<1x2x384xf32, #tpu.memory_space<vmem>>, %arg2: memref<1x2x384xi32, #tpu.memory_space<vmem>>) attributes {dimension_semantics = [#tpu.dimension_semantics<parallel>], iteration_bounds = array<i64: 2>, scalar_prefetch = 0 : i64, scratch_operands = 0 : i64, tpu.core_type = #tpu.core_type<tc>, window_params = [{transform_indices = @transform_0, window_bounds = array<i64: 1, 2, 384>}, {transform_indices = @transform_1, window_bounds = array<i64: 1, 2, 384>}]} {
    %c0 = arith.constant 0 : index
    %c0_0 = arith.constant 0 : index
    %c0_1 = arith.constant 0 : index
    %0 = vector.load %arg1[%c0, %c0_0, %c0_1] : memref<1x2x384xf32, #tpu.memory_space<vmem>>, vector<1x2x384xf32>
    %cst = arith.constant 5.000000e-02 : f32
    %1 = vector.broadcast %cst : f32 to vector<1x2x384xf32>
    %2 = arith.divf %0, %1 : vector<1x2x384xf32>
    %3 = math.floor %2 : vector<1x2x384xf32>
    %4 = arith.fptosi %3 : vector<1x2x384xf32> to vector<1x2x384xi32>
    %5 = tpu.iota {dimensions = array<i32: 2>} : vector<1x1x384xi32>
    %c3_i32 = arith.constant 3 : i32
    %c0_i32 = arith.constant 0 : i32
    %6 = arith.cmpi eq, %c3_i32, %c0_i32 : i32
    %c1_i32 = arith.constant 1 : i32
    %7 = arith.select %6, %c1_i32, %c3_i32 : i32
    %8 = vector.broadcast %7 : i32 to vector<1x1x384xi32>
    %9 = arith.remsi %5, %8 : vector<1x1x384xi32>
    %c0_i32_2 = arith.constant 0 : i32
    %10 = vector.broadcast %c0_i32_2 : i32 to vector<1x1x384xi32>
    %11 = arith.cmpi ne, %9, %10 : vector<1x1x384xi32>
    %c0_i32_3 = arith.constant 0 : i32
    %12 = vector.broadcast %c0_i32_3 : i32 to vector<1x1x384xi32>
    %13 = arith.cmpi slt, %9, %12 : vector<1x1x384xi32>
    %c0_i32_4 = arith.constant 0 : i32
    %14 = arith.cmpi slt, %7, %c0_i32_4 : i32
    %15 = vector.broadcast %14 : i1 to vector<1x1x384xi1>
    %16 = vector.broadcast %15 : vector<1x1x384xi1> to vector<1x1x384xi1>
    %17 = arith.xori %13, %16 : vector<1x1x384xi1>
    %18 = arith.andi %17, %11 : vector<1x1x384xi1>
    %19 = vector.broadcast %7 : i32 to vector<1x1x384xi32>
    %20 = arith.addi %9, %19 : vector<1x1x384xi32>
    %21 = arith.select %18, %20, %9 : vector<1x1x384xi1>, vector<1x1x384xi32>
    %cst_5 = arith.constant dense<2147483647> : vector<1x384xi32>
    %22 = vector.multi_reduction <minsi>, %4, %cst_5 [1] : vector<1x2x384xi32> to vector<1x384xi32>
    %23 = vector.shape_cast %22 : vector<1x384xi32> to vector<1x1x384xi32>
    %c0_i32_6 = arith.constant 0 : i32
    %24 = vector.broadcast %c0_i32_6 : i32 to vector<1x1x384xi32>
    %25 = arith.cmpi eq, %21, %24 : vector<1x1x384xi32>
    %c2147483647_i32 = arith.constant 2147483647 : i32
    %26 = vector.broadcast %c2147483647_i32 : i32 to vector<1x1x384xi32>
    %27 = arith.select %25, %23, %26 : vector<1x1x384xi1>, vector<1x1x384xi32>
    %cst_7 = arith.constant dense<2147483647> : vector<1x1xi32>
    %28 = vector.multi_reduction <minsi>, %27, %cst_7 [2] : vector<1x1x384xi32> to vector<1x1xi32>
    %29 = vector.shape_cast %28 : vector<1x1xi32> to vector<1x1x1xi32>
    %c1_i32_8 = arith.constant 1 : i32
    %30 = vector.broadcast %c1_i32_8 : i32 to vector<1x1x384xi32>
    %31 = arith.cmpi eq, %21, %30 : vector<1x1x384xi32>
    %c2147483647_i32_9 = arith.constant 2147483647 : i32
    %32 = vector.broadcast %c2147483647_i32_9 : i32 to vector<1x1x384xi32>
    %33 = arith.select %31, %23, %32 : vector<1x1x384xi1>, vector<1x1x384xi32>
    %cst_10 = arith.constant dense<2147483647> : vector<1x1xi32>
    %34 = vector.multi_reduction <minsi>, %33, %cst_10 [2] : vector<1x1x384xi32> to vector<1x1xi32>
    %35 = vector.shape_cast %34 : vector<1x1xi32> to vector<1x1x1xi32>
    %c2_i32 = arith.constant 2 : i32
    %36 = vector.broadcast %c2_i32 : i32 to vector<1x1x384xi32>
    %37 = arith.cmpi eq, %21, %36 : vector<1x1x384xi32>
    %c2147483647_i32_11 = arith.constant 2147483647 : i32
    %38 = vector.broadcast %c2147483647_i32_11 : i32 to vector<1x1x384xi32>
    %39 = arith.select %37, %23, %38 : vector<1x1x384xi1>, vector<1x1x384xi32>
    %cst_12 = arith.constant dense<2147483647> : vector<1x1xi32>
    %40 = vector.multi_reduction <minsi>, %39, %cst_12 [2] : vector<1x1x384xi32> to vector<1x1xi32>
    %41 = vector.shape_cast %40 : vector<1x1xi32> to vector<1x1x1xi32>
    %c0_i32_13 = arith.constant 0 : i32
    %42 = vector.broadcast %c0_i32_13 : i32 to vector<1x1x384xi32>
    %43 = arith.cmpi eq, %21, %42 : vector<1x1x384xi32>
    %c1_i32_14 = arith.constant 1 : i32
    %44 = vector.broadcast %c1_i32_14 : i32 to vector<1x1x384xi32>
    %45 = arith.cmpi eq, %21, %44 : vector<1x1x384xi32>
    %46 = vector.shape_cast %35 : vector<1x1x1xi32> to vector<1x1x1xi32>
    %47 = vector.broadcast %46 : vector<1x1x1xi32> to vector<1x1x384xi32>
    %48 = vector.shape_cast %41 : vector<1x1x1xi32> to vector<1x1x1xi32>
    %49 = vector.broadcast %48 : vector<1x1x1xi32> to vector<1x1x384xi32>
    %50 = arith.select %45, %47, %49 : vector<1x1x384xi1>, vector<1x1x384xi32>
    %51 = vector.shape_cast %29 : vector<1x1x1xi32> to vector<1x1x1xi32>
    %52 = vector.broadcast %51 : vector<1x1x1xi32> to vector<1x1x384xi32>
    %53 = arith.select %43, %52, %50 : vector<1x1x384xi1>, vector<1x1x384xi32>
    %54 = vector.broadcast %53 : vector<1x1x384xi32> to vector<1x2x384xi32>
    %55 = arith.subi %4, %54 : vector<1x2x384xi32>
    %c0_15 = arith.constant 0 : index
    %c0_16 = arith.constant 0 : index
    %c0_17 = arith.constant 0 : index
    %56 = vector.load %arg2[%c0_15, %c0_16, %c0_17] : memref<1x2x384xi32, #tpu.memory_space<vmem>>, vector<1x2x384xi32>
    tpu.vector_store %arg2[%c0_15, %c0_16, %c0_17], %55 {strides = array<i32>} : memref<1x2x384xi32, #tpu.memory_space<vmem>>, vector<1x2x384xi32>,
    return
  }
  func.func @transform_0(%arg0: i32) -> (i32, i32, i32) {
    %c0_i32 = arith.constant 0 : i32
    %c0_i32_0 = arith.constant 0 : i32
    %c0_i32_1 = arith.constant 0 : i32
    return %arg0, %c0_i32, %c0_i32_0 : i32, i32, i32
  }
  func.func @transform_1(%arg0: i32) -> (i32, i32, i32) {
    %c0_i32 = arith.constant 0 : i32
    %c0_i32_0 = arith.constant 0 : i32
    %c0_i32_1 = arith.constant 0 : i32
    return %arg0, %c0_i32, %c0_i32_0 : i32, i32, i32
  }
}

</mosaic_0001>

<bundles_post_ra>
// kernel: tpu_custom_call.1
= control target key start
LH: loop header
LB: loop body
LE: loop exit
PB: predicated region body
PF: predicated region fallthrough
CT: control target
= control target key end

     0   :  { %6 = vsyncpa [#allocation3], 0  ;;  %s824_s0 = inlined_call_operand.hbm [shape: f32[2,2,384], index: 0, kind: input, shape index: {}]   ;;  %s825_s1 = inlined_call_operand.hbm [shape: s32[2,2,384], index: 1, kind: output, shape index: {}]  }
   0x1   :  { %8 = vsyncpa [#allocation3 + $0x1], 0 }
   0x2   :  { %9 = vsyncpa [#allocation4], 0 }
   0x3   :  { %11 = vsyncpa [#allocation4 + $0x1], 0  ;;  %s633_s6 = smov 0   ;;  %s635_s7 = smov 0  }
   0x4   :  { %s637_s8 = smov 0   ;;  %s639_s9 = smov 0  }
   0x5 LB: > { %s654_s10 = sadd.s32 4294967295, %s619_s9   ;;  %s459_s11 = sadd.s32 4294967294, %s619_s9   ;;  %s619_s9 = sphi %s639_s9, %s833_s9   ;;  %s615_s8 = sphi %s637_s8, %s832_s8   ;;  %s611_s7 = sphi %s635_s7, %s831_s7   ;;  %s607_s6 = sphi %s633_s6, %s830_s6  }
   0x6   : > { %s658_s12 = sadd.s32 1, %s619_s9   ;;  %s24_s13 = sadd.s32 1, %s615_s8 }
   0x7   : > { %s21_s14 = ssub.s32 %s619_s9, %s658_s12  ;;  %p31_p0 = scmp.ne.s32.totalorder %s615_s8, %s611_s7 }
   0x8   : > { %p22_p1 = scmp.eq.s32.totalorder %s21_s14, 0  ;;  %p32_p2 = scmp.eq.s32.totalorder %s619_s9, 0 }
   0x9   : > { %p37_p3 = scmp.ne.s32.totalorder %s611_s7, %s607_s6  ;;  %p38_p4 = scmp.eq.s32.totalorder %s654_s10, 0 }
   0xa   : > { %s670_s15 = scalar_select %p22_p1, %s615_s8, %s24_s13  }
   0xb   : > { %p33_p5 = por %p32_p2, %p31_p0  ;;  %p672_p6 = por %p38_p4, %p37_p3 }
   0xc   : > { %p61_p7 = scmp.eq.s32.totalorder %s654_s10, 1  ;;  %p67_p8 = scmp.eq.s32.totalorder %s459_s11, 1 }
   0xd   : > { %p461_p9 = scmp.ge.s32.totalorder %s619_s9, 2  ;;  %p485_p10 = scmp.lt.s32.totalorder %s619_s9, 2 }
   0xe   : > { %p679_p11 = por %p61_p7, %p31_p0  ;;  %p683_p12 = por %p67_p8, %p37_p3 }
   0xf   : > { %s87_s19 = sand.u32 1, %s615_s8   ;;  %s468_s20 = smul.u32 6, %s619_s9 }
  0x10   : > { %s467_s21 = smul.u32 6, %s87_s19  ;;  %p692_p13 = pnand %p485_p10, %p33_p5 }
  0x11   : > { %s96_s24 = scalar_lea.hbm %s824_s0, %s468_s20  ;;  %s88_s29 = scalar_lea.sflag [#allocation3], %s87_s19 }
  0x12   : > { %s98_s26 = sshll.u32 %s96_s24, 4  ;;  %s91_s27 = scalar_lea.vmem [#allocation2], %s467_s21  ;;  %s99_s26 = int_to_ptr.hbm [resolvable:$true] %s98_s26 }
  0x13   : > { %s100_s28 = sshll.u32 %s91_s27, 4  ;;  %s523_s30 = sshra.s32 %s99_s26, 4  ;;  %s101_s28 = int_to_ptr.vmem [resolvable:$true] %s100_s28  ;;  %s524_s30 = int_to_ptr.hbm [resolvable:$true] %s523_s30 }
  0x14   : > { %s525_s2 = scalar_lea.hbm %s524_s30, 6  ;;  %p527_p1 = pneg %p692_p13 }
  0x15   : > { %p526_p0 = scmp.ne.s32.totalorder %s524_s30, %s525_s2  ;;  %s530_s5 = scalar_lea.hbm %s824_s0, 12 }
  0x16   : > { %p531_p4 = scmp.lt.s32.totalorder %s524_s30, %s824_s0  ;;  %p532_p5 = scmp.lt.s32.totalorder %s530_s5, %s525_s2 }
  0x17   : > { %p528_p2 = pnand %p527_p1, %p526_p0 }
  0x18   : > { %p533_p7 = por %p532_p5, %p531_p4 }
  0x19   : > { %p529_p3 = pneg %p528_p2 }
  0x1b   : > { %p534_p8 = pnand %p533_p7, %p529_p3 }
  0x1d   : > { %537 = shalt.err (!%p534_p8)
}
  0x1e   : > { %480 = dma.hbm_to_vmem [thread:$0]  (!%p692_p13), %s99_s26, 96, %s101_s28, %s88_s29  }
  0x1f   : > { %p463_p10 = scmp.ge.s32.totalorder %s619_s9, 1  ;;  %p105_p0 = scmp.lt.s32.totalorder %s619_s9, 3 }
  0x21   : > { %p106_p1 = pnand %p463_p10, %p105_p0 }
  0x22   : > { %s709_s14 = sand.u32 (!%p106_p1), 1, %s611_s7  }
  0x23   : > { %109 = sbr.rel (%p106_p1) target bundleno = 360 (0x168), region = 24  ;;  %s112_s20 = scalar_lea.sflag (!%p106_p1), [#allocation3], %s709_s14 }
  0x24   : > { %s469_s19 = smul.u32 (!%p106_p1), 6, %s709_s14 }
  0x26   : > { %s715_s21 = scalar_lea.vmem (!%p106_p1), [#allocation2], %s469_s19 }
  0x28   : > { %598 = dma.done.wait (%p672_p6), %s112_s20, 96  }
  0x29   : > { %600 = vsyncadd (%p672_p6), %s112_s20, 4294967200  ;;  %v146_v0 = vlaneseq  ;;  %v621_v1 = vmov 0.05   ;;  %v622_v26 = vmov 0   ;;  %v135_v36 = vld [vmem:[%s715_s21] sm:$0x3f] }
  0x2a   : > { %521 = vrcp.f32 %v621_v1  ;;  %vm256_vm9 = vcmask 1041408   ;;  %s472_s16 = smul.u32 6, %s654_s10  ;;  %s134_s10 = scalar_lea.vmem [#allocation5], %s469_s19 }
  0x2b   : > { %v721_v2 = vand.u32 127, %v146_v0  ;;  %s386_s25 = sshll.u32 %s134_s10, 4  ;;  %s373_s27 = scalar_lea.sflag [#allocation4], %s709_s14  ;;  %s387_s25 = int_to_ptr.vmem [resolvable:$true] %s386_s25 }
  0x2c   : > { %s384_s24 = scalar_lea.hbm %s825_s1, %s472_s16  ;;  %s573_s3 = scalar_lea.hbm %s825_s1, 12 }
  0x2d   : > { %v724_v3 = vadd.s32 128, %v721_v2  ;;  %v727_v4 = vadd.s32 256, %v721_v2  ;;  %v153_v5 = vand.u32 65535, %v721_v2  ;;  %v154_v6 = vshrl.u32 %v721_v2, 16  ;;  %s388_s26 = sshll.u32 %s384_s24, 4  ;;  %s389_s26 = int_to_ptr.hbm [resolvable:$true] %s388_s26 }
  0x2e   : > { %s567_s28 = sshra.s32 %s389_s26, 4  ;;  %s568_s28 = int_to_ptr.hbm [resolvable:$true] %s567_s28 }
  0x2f   : > { %v156_v7 = vmul.u32 43691, %v153_v5  ;;  %v157_v8 = vmul.u32 43690, %v153_v5  ;;  %v158_v9 = vmul.u32 43691, %v154_v6  ;;  %v159_v11 = vmul.u32 43690, %v154_v6  ;;  %s569_s29 = scalar_lea.hbm %s568_s28, 6  ;;  %p574_p3 = scmp.lt.s32.totalorder %s568_s28, %s825_s1 }
  0x30   : > { %v522_v10 = vpop.eup %521  ;;  %v182_v12 = vand.u32 65535, %v724_v3  ;;  %v183_v13 = vshrl.u32 %v724_v3, 16  ;;  %v211_v14 = vand.u32 65535, %v727_v4  ;;  %v212_v17 = vshrl.u32 %v727_v4, 16  ;;  %p570_p6 = scmp.ne.s32.totalorder %s568_s28, %s569_s29  ;;  %p575_p4 = scmp.lt.s32.totalorder %s573_s3, %s569_s29 }
  0x31   : > { %v137_v15 = vmul.f32 0.05, %v522_v10  ;;  %vm141_vm0 = vweird.f32 %v522_v10  ;;  %v160_v16 = vshll.u32 %v157_v8, 16  ;;  %v161_v18 = vshrl.u32 %v157_v8, 16 }
  0x32   : > { %v162_v19 = vshll.u32 %v158_v9, 16  ;;  %v185_v20 = vmul.u32 43691, %v182_v12  ;;  %v186_v21 = vmul.u32 43690, %v182_v12  ;;  %v187_v24 = vmul.u32 43691, %v183_v13  ;;  %p571_p13 = pnand %p570_p6, %p679_p11  ;;  %p576_p5 = por %p575_p4, %p574_p3 }
  0x33   : > { %v138_v22 = vsub.f32 1.0, %v137_v15  ;;  %vm164_vm1 = vc.u32 %v156_v7, %v160_v16  ;;  %v166_v23 = vadd.s32 %v160_v16, %v156_v7  ;;  %v163_v25 = vshrl.u32 %v158_v9, 16 }
  0x34   : > { %v165_v27 = vsel %vm164_vm1, 1, %v622_v26  ;;  %v188_v28 = vmul.u32 43690, %v183_v13  ;;  %v189_v29 = vshll.u32 %v186_v21, 16  ;;  %v191_v32 = vshll.u32 %v187_v24, 16  ;;  %p572_p2 = pneg %p571_p13 }
  0x35   : > { %v139_v30 = vmul.f32 %v522_v10, %v138_v22  ;;  %v167_v31 = vadd.s32 %v165_v27, %v159_v11  ;;  %vm168_vm2 = vc.u32 %v166_v23, %v162_v19  ;;  %v190_v34 = vshrl.u32 %v186_v21, 16 }
  0x36   : > { %v169_v33 = vsel %vm168_vm2, 1, %v622_v26  ;;  %vm193_vm3 = vc.u32 %v185_v20, %v189_v29  ;;  %v195_v35 = vadd.s32 %v189_v29, %v185_v20  ;;  %v214_v40 = vmul.u32 43691, %v211_v14  ;;  %p577_p7 = pnand %p576_p5, %p572_p2 }
  0x37   : > { %v140_v37 = vadd.f32 %v522_v10, %v139_v30  ;;  %v171_v38 = vadd.s32 %v169_v33, %v167_v31  ;;  %v194_v39 = vsel %vm193_vm3, 1, %v622_v26  ;;  %v215_v42 = vmul.u32 43690, %v211_v14 }
  0x38   : > { %v196_v41 = vadd.s32 %v194_v39, %v188_v28  ;;  %vm197_vm4 = vc.u32 %v195_v35, %v191_v32  ;;  %v216_v43 = vmul.u32 43691, %v212_v17  ;;  %v192_v46 = vshrl.u32 %v187_v24, 16 }
  0x39   : > { %v142_v44 = vsel %vm141_vm0, %v522_v10, %v140_v37  ;;  %v172_v45 = vadd.s32 %v171_v38, %v161_v18  ;;  %v198_v47 = vsel %vm197_vm4, 1, %v622_v26  ;;  %v217_v50 = vmul.u32 43690, %v212_v17 }
  0x3a   : > { %v143_v48 = vmul.f32 %v142_v44, %v135_v36  ;;  %v200_v49 = vadd.s32 %v198_v47, %v196_v41  ;;  %v218_v51 = vshll.u32 %v215_v42, 16  ;;  %v220_v53 = vshll.u32 %v216_v43, 16 }
  0x3b   : > { %v173_v52 = vadd.s32 %v172_v45, %v163_v25  ;;  %v219_v58 = vshrl.u32 %v215_v42, 16  ;;  %v221_v5 = vshrl.u32 %v216_v43, 16 }
  0x3c   : > { %v144_v54 = vfloor.f32 %v143_v48  ;;  %v201_v55 = vadd.s32 %v200_v49, %v190_v34  ;;  %vm222_vm5 = vc.u32 %v214_v40, %v218_v51  ;;  %v224_v56 = vadd.s32 %v218_v51, %v214_v40 }
  0x3d   : > { %v174_v57 = vshrl.u32 %v173_v52, 1  ;;  %v223_v59 = vsel %vm222_vm5, 1, %v622_v26 }
  0x3e   : > { %v737_v60 = vcvt.f32.s32 %v144_v54  ;;  %v202_v61 = vadd.s32 %v201_v55, %v192_v46  ;;  %v225_v62 = vadd.s32 %v223_v59, %v217_v50  ;;  %vm226_vm6 = vc.u32 %v224_v56, %v220_v53 }
  0x3f   : > { %v175_v63 = vmul.u32 3, %v174_v57  ;;  %v227_v0 = vsel %vm226_vm6, 1, %v622_v26 }
  0x40   : > { %252 = vst [vmem:[#allocation1] ss:$4 sm:$0xff] %v737_v60  ;;  %v203_v1 = vshrl.u32 %v202_v61, 1  ;;  %v229_v6 = vadd.s32 %v227_v0, %v225_v62 }
  0x41   : > { %v176_v7 = vsub.s32 %v721_v2, %v175_v63 }
  0x42   : > { %v204_v8 = vmul.u32 3, %v203_v1  ;;  %v230_v9 = vadd.s32 %v229_v6, %v219_v58 }
  0x43   : > { %vm237_vm7 = vcmp.ne.s32.totalorder %v176_v7, 0  ;;  %vm240_vm8 = vcmp.lt.s32.totalorder %v176_v7, 0  ;;  %v246_v12 = vadd.s32 3, %v176_v7 }
  0x44   : > { %v205_v10 = vsub.s32 %v724_v3, %v204_v8  ;;  %v231_v11 = vadd.s32 %v230_v9, %v221_v5  ;;  %vm243_vm12 = vmand %vm240_vm8, %vm237_vm7 }
  0x45   : > { %v746_v24 = vsel %vm243_vm12, %v246_v12, %v176_v7 }
  0x46   : > { %v232_v13 = vshrl.u32 %v231_v11, 1  ;;  %vm238_vm10 = vcmp.ne.s32.totalorder %v205_v10, 0  ;;  %vm241_vm11 = vcmp.lt.s32.totalorder %v205_v10, 0  ;;  %v247_v14 = vadd.s32 3, %v205_v10 }
  0x47   : > { %v253_v15 = vld.sshfl [vmem:[#allocation1] sm:$0xff pattern:$0x73625140]  ;;  %v254_v16 = vld.sshfl [vmem:[#allocation1 + $0x8] sm:$0xff pattern:$0x73625140]  ;;  %vm244_vm13 = vmand %vm241_vm11, %vm238_vm10 }
  0x48   : > { %v233_v17 = vmul.u32 3, %v232_v13  ;;  %v255_v18 = vld.sshfl [vmem:[#allocation1 + $0x10] sm:$0xff pattern:$0x73625140]  ;;  %v257_v2 = vsel %vm256_vm9, %v253_v15, 2147483647  ;;  %v748_v25 = vsel %vm244_vm13, %v247_v14, %v205_v10 }
  0x49   : > { %v258_v19 = vrot.slane %v257_v2, 4  ;;  %v267_v3 = vsel %vm256_vm9, %v254_v16, 2147483647  ;;  %v277_v20 = vsel %vm256_vm9, %v255_v18, 2147483647  ;;  %vm311_vm5 = vcmp.eq.s32.totalorder %v746_v24, 1 }
  0x4a   : > { %v234_v21 = vsub.s32 %v727_v4, %v233_v17  ;;  %v268_v22 = vrot.slane %v267_v3, 4  ;;  %v278_v23 = vrot.slane %v277_v20, 4  ;;  %vm312_vm6 = vcmp.eq.s32.totalorder %v748_v25, 1 }
  0x4b   : > { %vm259_vm14 = vcmp.lt.s32.totalorder %v257_v2, %v258_v19  ;;  %vm335_vm10 = vcmp.eq.s32.totalorder %v746_v24, 2  ;;  %vm336_vm11 = vcmp.eq.s32.totalorder %v748_v25, 2  ;;  %vm287_vm13 = vcmp.eq.s32.totalorder %v746_v24, 0 }
  0x4c   : > { %vm239_vm15 = vcmp.ne.s32.totalorder %v234_v21, 0  ;;  %vm242_vm0 = vcmp.lt.s32.totalorder %v234_v21, 0  ;;  %v260_v26 = vsel %vm259_vm14, %v257_v2, %v258_v19  ;;  %v248_v27 = vadd.s32 3, %v234_v21 }
  0x4d   : > { %v261_v28 = vrot.slane %v260_v26, 2  ;;  %vm269_vm1 = vcmp.lt.s32.totalorder %v267_v3, %v268_v22  ;;  %vm279_vm2 = vcmp.lt.s32.totalorder %v277_v20, %v278_v23  ;;  %vm245_vm3 = vmand %vm242_vm0, %vm239_vm15  ;;  %vm288_vm0 = vcmp.eq.s32.totalorder %v748_v25, 0 }
  0x4e   : > { %v270_v29 = vsel %vm269_vm1, %v267_v3, %v268_v22  ;;  %v280_v30 = vsel %vm279_vm2, %v277_v20, %v278_v23  ;;  %v752_v33 = vsel %vm245_vm3, %v248_v27, %v234_v21 }
  0x4f   : > { %vm262_vm4 = vcmp.lt.s32.totalorder %v260_v26, %v261_v28  ;;  %v271_v31 = vrot.slane %v270_v29, 2  ;;  %v281_v4 = vrot.slane %v280_v30, 2  ;;  %vm313_vm14 = vcmp.eq.s32.totalorder %v752_v33, 1 }
  0x50   : > { %v263_v32 = vsel %vm262_vm4, %v260_v26, %v261_v28  ;;  %vm337_vm15 = vcmp.eq.s32.totalorder %v752_v33, 2  ;;  %vm289_vm3 = vcmp.eq.s32.totalorder %v752_v33, 0 }
  0x51   : > { %v264_v34 = vrot.slane %v263_v32, 1  ;;  %vm272_vm7 = vcmp.lt.s32.totalorder %v270_v29, %v271_v31  ;;  %vm282_vm8 = vcmp.lt.s32.totalorder %v280_v30, %v281_v4 }
  0x52   : > { %v273_v35 = vsel %vm272_vm7, %v270_v29, %v271_v31  ;;  %v283_v36 = vsel %vm282_vm8, %v280_v30, %v281_v4 }
  0x53   : > { %vm265_vm12 = vcmp.lt.s32.totalorder %v263_v32, %v264_v34  ;;  %v274_v37 = vrot.slane %v273_v35, 1  ;;  %v284_v38 = vrot.slane %v283_v36, 1 }
  0x54   : > { %v266_v39 = vsel %vm265_vm12, %v263_v32, %v264_v34 }
  0x55   : > { %vm275_vm1 = vcmp.lt.s32.totalorder %v273_v35, %v274_v37  ;;  %vm285_vm2 = vcmp.lt.s32.totalorder %v283_v36, %v284_v38  ;;  %v314_v40 = vsel %vm311_vm5, %v266_v39, 2147483647  ;;  %v338_v41 = vsel %vm335_vm10, %v266_v39, 2147483647 }
  0x56   : > { %v276_v42 = vsel %vm275_vm1, %v273_v35, %v274_v37  ;;  %v286_v43 = vsel %vm285_vm2, %v283_v36, %v284_v38  ;;  %v290_v44 = vsel %vm287_vm13, %v266_v39, 2147483647 }
  0x57   : > { %v315_v45 = vsel %vm312_vm6, %v276_v42, 2147483647  ;;  %v316_v46 = vsel %vm313_vm14, %v286_v43, 2147483647  ;;  %v339_v47 = vsel %vm336_vm11, %v276_v42, 2147483647 }
  0x58   : > { %vm317_vm4 = vcmp.lt.s32.totalorder %v314_v40, %v315_v45  ;;  %v340_v48 = vsel %vm337_vm15, %v286_v43, 2147483647  ;;  %vm341_vm7 = vcmp.lt.s32.totalorder %v338_v41, %v339_v47  ;;  %v291_v49 = vsel %vm288_vm0, %v276_v42, 2147483647 }
  0x59   : > { %v318_v50 = vsel %vm317_vm4, %v314_v40, %v315_v45  ;;  %v342_v51 = vsel %vm341_vm7, %v338_v41, %v339_v47  ;;  %v292_v52 = vsel %vm289_vm3, %v286_v43, 2147483647  ;;  %vm293_vm8 = vcmp.lt.s32.totalorder %v290_v44, %v291_v49 }
  0x5a   : > { %vm319_vm10 = vcmp.lt.s32.totalorder %v318_v50, %v316_v46  ;;  %vm343_vm12 = vcmp.lt.s32.totalorder %v342_v51, %v340_v48  ;;  %v294_v53 = vsel %vm293_vm8, %v290_v44, %v291_v49 }
  0x5b   : > { %v320_v54 = vsel %vm319_vm10, %v318_v50, %v316_v46  ;;  %vm295_vm1 = vcmp.lt.s32.totalorder %v294_v53, %v292_v52  ;;  %v344_v57 = vsel %vm343_vm12, %v342_v51, %v340_v48 }
  0x5c   : > { %v322_v55 = vshra.s32 %v320_v54, 16  ;;  %v296_v56 = vsel %vm295_vm1, %v294_v53, %v292_v52  ;;  %v346_v62 = vshra.s32 %v344_v57, 16  ;;  %v321_v0 = vand.u32 65535, %v320_v54 }
  0x5d   : > { %v298_v58 = vshra.s32 %v296_v56, 16  ;;  %v345_v7 = vand.u32 65535, %v344_v57  ;;  %v297_v10 = vand.u32 65535, %v296_v56 }
  0x5e   : > { %v324_v59 = vcvt.s32.f32 %v322_v55  ;;  %v348_v63 = vcvt.s32.f32 %v346_v62  ;;  %v323_v1 = vcvt.s32.f32 %v321_v0 }
  0x5f   : > { %v300_v61 = vcvt.s32.f32 %v298_v58  ;;  %v347_v8 = vcvt.s32.f32 %v345_v7  ;;  %v299_v13 = vcvt.s32.f32 %v297_v10 }
  0x60   : > { %325 = vmin.xlane.f32.xlu0 %v324_v59 }
  0x61   : > { %301 = vmin.xlane.f32.xlu1 %v300_v61 }
  0x68   : > { %349 = vmin.xlane.f32.xlu0 %v348_v63 }
  0xd3   : > { %v326_v5 = vpop.xlane.xlu0 %325 }
  0xd4   : > { %vm327_vm11 = vcmp.eq.f32.partialorder %v324_v59, %v326_v5  ;;  %v302_v12 = vpop.xlane.xlu1 %301  ;;  %v332_v16 = vcvt.f32.s32 %v326_v5 }
  0xd5   : > { %v328_v6 = vsel %vm327_vm11, %v323_v1, inf  ;;  %vm303_vm2 = vcmp.eq.f32.partialorder %v300_v61, %v302_v12  ;;  %v308_v23 = vcvt.f32.s32 %v302_v12 }
  0xd6   : > { %329 = vmin.xlane.f32.xlu1 %v328_v6  ;;  %v304_v14 = vsel %vm303_vm2, %v299_v13, inf  ;;  %v333_v19 = vshll.u32 %v332_v16, 16 }
  0xd7   : > { %v309_v30 = vshll.u32 %v308_v23, 16 }
  0xdb   : > { %v350_v9 = vpop.xlane.xlu0 %349 }
  0xdc   : > { %vm351_vm15 = vcmp.eq.f32.partialorder %v348_v63, %v350_v9  ;;  %v356_v17 = vcvt.f32.s32 %v350_v9 }
  0xdd   : > { %v352_v11 = vsel %vm351_vm15, %v347_v8, inf }
  0xde   : > { %353 = vmin.xlane.f32.xlu2 %v352_v11  ;;  %v357_v3 = vshll.u32 %v356_v17, 16 }
  0xe6   : > { %305 = vmin.xlane.f32.xlu2 %v304_v14 }
 0x149   : > { %v330_v15 = vpop.xlane.xlu1 %329 }
 0x14a   : > { %v331_v18 = vcvt.f32.s32 %v330_v15 }
 0x14c   : > { %v334_v21 = vadd.s32 %v333_v19, %v331_v18 }
 0x151   : > { %v354_v2 = vpop.xlane.xlu2 %353 }
 0x152   : > { %v355_v20 = vcvt.f32.s32 %v354_v2 }
 0x154   : > { %v358_v22 = vadd.s32 %v357_v3, %v355_v20 }
 0x156   : > { %v359_v26 = vsel %vm311_vm5, %v334_v21, %v358_v22  ;;  %v360_v27 = vsel %vm312_vm6, %v334_v21, %v358_v22  ;;  %v361_v28 = vsel %vm313_vm14, %v334_v21, %v358_v22  ;;  %vm368_vm5 = vcmask 1043456  }
 0x159   : > { %v306_v29 = vpop.xlane.xlu2 %305 }
 0x15a   : > { %v307_v31 = vcvt.f32.s32 %v306_v29 }
 0x15c   : > { %v310_v4 = vadd.s32 %v309_v30, %v307_v31 }
 0x15e   : > { %v363_v32 = vsel %vm288_vm0, %v310_v4, %v360_v27  ;;  %v364_v34 = vsel %vm289_vm3, %v310_v4, %v361_v28  ;;  %v362_v37 = vsel %vm287_vm13, %v310_v4, %v359_v26 }
 0x15f   : > { %v365_v35 = vrot.slane %v363_v32, 6  ;;  %v366_v36 = vrot.slane %v364_v34, 4 }
 0x161   : > { %v367_v38 = vsel %vm256_vm9, %v362_v37, %v365_v35 }
 0x162   : > { %v369_v39 = vsel %vm368_vm5, %v367_v38, %v366_v36 }
 0x163   : > { %v370_v25 = vsub.s32 %v737_v60, %v369_v39 }
 0x165   : > { %371 = vst [vmem:[%s134_s10] sm:$0x3f] %v370_v25 }
 0x166   : > { %580 = shalt.err (!%p577_p7)
}
 0x167   : > { %475 = dma.vmem_to_hbm [thread:$0]  (%p679_p11), %s387_s25, 96, %s389_s26, %s373_s27  }
 0x168 PF: > { %s400_s11 = sand.u32 1, %s607_s6   ;;  %p482_p8 = pnand %p461_p9, %p683_p12 }
 0x169   : > { %s401_s13 = scalar_lea.sflag [#allocation4], %s400_s11 }
 0x16a   : > { %p483_p10 = pneg %p482_p8 }
 0x16c   : > { %602 = dma.done.wait (%p483_p10), %s401_s13, 96  }
 0x16d   : > { %604 = vsyncadd (%p483_p10), %s401_s13, 4294967200  ;;  %p14_p0 = scmp.ge.s32.totalorder %s658_s12, 4   ;;  %s830_s6 = smov %s611_s7 }
 0x16e   : > { %s831_s7 = smov %s615_s8  ;;  %s832_s8 = smov %s670_s15 }
 0x16f   : > { %s833_s9 = smov %s658_s12  ;;  %16 = sbr.rel (!%p14_p0) target bundleno = 5 (0x5), region = 69 }
 0x174   :  { %407 = vsyncpa [#allocation3], 1 }
 0x175   :  { %409 = vsyncpa [#allocation3 + $0x1], 1 }
 0x176   :  { %410 = vsyncpa [#allocation4], 1 }
 0x177   :  { %412 = vsyncpa [#allocation4 + $0x1], 1 }

</bundles_post_ra>
